<compile_context>
chip_gen: v5e
topology: v5e:2x2
jax: 0.10.0
libtpu: 0.0.40
codegen_flags: <defaults>
</compile_context>

<pallas_src>
import jax
import jax.numpy as jnp
from jax.experimental import pallas as pl
from jax.experimental.pallas import tpu as pltpu

# ---- hyper-parameters ----
EMBED_SIZE = 16
TAG_EMBED_SIZE = 8
HIDDEN_SIZE = 32
NUM_LAYERS = 1
NUM_DIRS = 1           # unidirectional
BIDIRECTIONAL = False
DROPOUT = 0.0          # eval-mode: dropout is identity
PAD_IDX = 0

VOCAB_SIZE = 50
NUM_TAGS = 6

LSTM_INPUT_SIZE = EMBED_SIZE + TAG_EMBED_SIZE + 1  # = 25
HIDDEN = HIDDEN_SIZE // NUM_DIRS                   # = 32
SUBLANE = 8                                        # batch padded to a full sublane tile


# --------------------------------------------------------------------------
# Pallas kernel: one grid step == one time-chunk of the LSTM.
# --------------------------------------------------------------------------
def _lstm_chunk_kernel(x_ref, wih_ref, whh_ref, b_ref, h_out_ref,
                       h_carry, c_carry, gx_ref):
    Bp, H = h_carry.shape              # Bp == 8 (sublane-padded batch)
    chunk_rows = gx_ref.shape[0]
    t_chunk = chunk_rows // Bp

    @pl.when(pl.program_id(0) == 0)
    def _():
        # self.init_hidden(): h0 = c0 = 0
        h_carry[...] = jnp.zeros_like(h_carry)
        c_carry[...] = jnp.zeros_like(c_carry)

    # (1) Input projection for the whole chunk: one M = T_chunk*Bp MXU matmul,
    #     off the serial path.  Weights/bias were pre-scaled by 0.5 on the
    #     i/f/o gate lanes in the wrapper (tanh -> sigmoid trick).
    gx_ref[...] = (
        jnp.dot(x_ref[...], wih_ref[...], preferred_element_type=jnp.float32)
        + b_ref[...]
    )

    # Hoisted per-lane affine turning tanh(z/2) into sigmoid(z) on the i/f/o
    # lanes (PyTorch gate order i | f | g | o); g lanes pass through.
    lane = jax.lax.broadcasted_iota(jnp.int32, (Bp, 4 * H), 1)
    is_g = (lane >= 2 * H) & (lane < 3 * H)
    act_scale = jnp.where(is_g, 1.0, 0.5).astype(jnp.float32)
    act_shift = jnp.where(is_g, 0.0, 0.5).astype(jnp.float32)

    whh = whh_ref[...]                 # (H, 4H), VMEM-resident across the loop
    # NOTE: the dominant per-step MXU cost is re-pushing this RHS each step;
    # pltpu.matmul_push_rhs/matmul_acc_lhs could keep it staged in the MXU.
    # Kept as jnp.dot here for portability/robustness.

    # (2) Sequential recurrence: only h_{t-1} @ W_hh^T stays on the serial path.
    def step(t, carry):
        h, c = carry
        row = pl.multiple_of(t * Bp, SUBLANE)          # aligned (8, 128) access
        gates = gx_ref[pl.ds(row, Bp), :] + jnp.dot(
            h, whh, preferred_element_type=jnp.float32)            # (Bp, 4H)
        # Single transcendental for all four gates.
        act = act_scale * jnp.tanh(gates) + act_shift
        i_g = act[:, 0 * H:1 * H]
        f_g = act[:, 1 * H:2 * H]
        g_g = act[:, 2 * H:3 * H]
        o_g = act[:, 3 * H:4 * H]
        c = f_g * c + i_g * g_g
        h = o_g * jnp.tanh(c)
        h_out_ref[pl.ds(row, Bp), :] = h               # aligned sublane store
        return (h, c)

    h, c = jax.lax.fori_loop(0, t_chunk, step, (h_carry[...], c_carry[...]),
                             unroll=min(t_chunk, 8))   # bounded unroll
    h_carry[...] = h
    c_carry[...] = c


def _run_lstm_kernel(inp2d, wih, whh, b, *, t_chunk, batch):
    # inp2d : (T*B_pad, D) time-major rows (row t*B_pad + b == timestep t, seq b)
    TB, D = inp2d.shape
    H = whh.shape[0]
    chunk_rows = t_chunk * batch
    num_chunks = TB // chunk_rows

    full = lambda shape: pl.BlockSpec(shape, lambda n: (0, 0))

    return pl.pallas_call(
        _lstm_chunk_kernel,
        out_shape=jax.ShapeDtypeStruct((TB, H), jnp.float32),
        grid_spec=pltpu.PrefetchScalarGridSpec(
            num_scalar_prefetch=0,
            grid=(num_chunks,),
            in_specs=[
                pl.BlockSpec((chunk_rows, D), lambda n: (n, 0)),   # x chunk
                full((D, 4 * H)),                                  # W_ih^T (scaled)
                full((H, 4 * H)),                                  # W_hh^T (scaled)
                full((1, 4 * H)),                                  # fused bias (scaled)
            ],
            out_specs=pl.BlockSpec((chunk_rows, H), lambda n: (n, 0)),
            scratch_shapes=[
                pltpu.VMEM((batch, H), jnp.float32),         # h carry (across chunks)
                pltpu.VMEM((batch, H), jnp.float32),         # c carry (across chunks)
                pltpu.VMEM((chunk_rows, 4 * H), jnp.float32),  # precomputed gates_x
            ],
        ),
        compiler_params=pltpu.CompilerParams(
            dimension_semantics=("arbitrary",),   # strict time recurrence
        ),
    )(inp2d, wih, whh, b)


# --------------------------------------------------------------------------
# Parameter init (deterministic, mimics shapes from the module's __init__).
# --------------------------------------------------------------------------
def init_params(key):
    ks = jax.random.split(key, 8)
    bound = 1.0 / jnp.sqrt(HIDDEN)

    embed = jax.random.normal(ks[0], (VOCAB_SIZE, EMBED_SIZE), jnp.float32)
    embed = embed.at[PAD_IDX].set(0.0)                       # padding_idx
    embed_tag = jax.random.normal(ks[1], (NUM_TAGS, TAG_EMBED_SIZE), jnp.float32)
    embed_tag = embed_tag.at[PAD_IDX].set(0.0)               # padding_idx

    u = lambda k, shape: jax.random.uniform(k, shape, jnp.float32, -bound, bound)
    w_ih = u(ks[2], (4 * HIDDEN, LSTM_INPUT_SIZE))           # PyTorch layout (4H, D)
    w_hh = u(ks[3], (4 * HIDDEN, HIDDEN))
    b_ih = u(ks[4], (4 * HIDDEN,))
    b_hh = u(ks[5], (4 * HIDDEN,))
    w_out = u(ks[6], (NUM_TAGS, HIDDEN_SIZE))                # nn.Linear(H, num_tags)
    b_out = u(ks[7], (NUM_TAGS,))

    return dict(embed=embed, embed_tag=embed_tag,
                w_ih=w_ih, w_hh=w_hh, b_ih=b_ih, b_hh=b_hh,
                w_out=w_out, b_out=b_out)


# --------------------------------------------------------------------------
# Full forward (embedding / output Linear glue in JAX, recurrence in Pallas).
# --------------------------------------------------------------------------
@jax.jit
def lstm_forward(params, x, f, tags, mask):
    # x, tags: (B, T) int32 ; f: (B, 2, T) float32 ; mask: (B, T) float32
    B, T = x.shape
    H = HIDDEN
    embed_w = jnp.take(params["embed"], x, axis=0)           # (B, T, E)
    embed_t = jnp.take(params["embed_tag"], tags, axis=0)    # (B, T, Et)
    f1 = f[:, 0][..., None].astype(embed_w.dtype)            # (B, T, 1)
    inp = jnp.concatenate([embed_w, embed_t, f1], axis=2)    # (B, T, D)
    D = inp.shape[-1]

    # Pad the batch to a full sublane tile (8 rows) so every per-step slice in
    # the kernel is an aligned (8, lanes) access; zero rows are harmless and
    # sliced off afterwards.
    B_pad = ((B + SUBLANE - 1) // SUBLANE) * SUBLANE
    inp_p = jnp.zeros((B_pad, T, D), inp.dtype).at[:B].set(inp)

    # time-major rows: row t*B_pad + b == (timestep t, sequence b)
    inp2d = jnp.transpose(inp_p, (1, 0, 2)).reshape(T * B_pad, D)   # (T*B_pad, D)

    # Pre-scale the i/f/o gate columns by 0.5 so one tanh inside the kernel
    # covers both sigmoid (= 0.5*tanh(z/2) + 0.5) and tanh activations.
    gate_scale = jnp.concatenate([
        jnp.full((2 * H,), 0.5, jnp.float32),     # i, f
        jnp.ones((H,), jnp.float32),              # g (cell candidate)
        jnp.full((H,), 0.5, jnp.float32),         # o
    ])
    wih = params["w_ih"].T * gate_scale[None, :]                    # (D, 4H)
    whh = params["w_hh"].T * gate_scale[None, :]                    # (H, 4H)
    b = ((params["b_ih"] + params["b_hh"]) * gate_scale).reshape(1, -1)

    # Whole sequence fits comfortably in VMEM at these sizes -> single chunk.
    # For long sequences pick t_chunk per generation (v7x has half of v6e's
    # VMEM) and let the grid stream chunks while h/c carry in scratch.
    h2d = _run_lstm_kernel(inp2d, wih, whh, b, t_chunk=T, batch=B_pad)  # (T*B_pad, H)

    h = h2d.reshape(T, B_pad, H)[:, :B]                      # (T, B, H)
    h = jnp.transpose(h, (1, 0, 2))                          # (B, T, H)
    # Output Linear + bias + mask in XLA (fused for free on the tiny result);
    # keeps the kernel's HBM writes to the useful 32-wide hidden states only.
    y = h @ params["w_out"].T + params["b_out"]              # (B, T, num_tags)
    return y * mask[..., None].astype(y.dtype)


# --------------------------------------------------------------------------
# Pure-JAX reference (lax.scan) for a correctness check.
# --------------------------------------------------------------------------
def lstm_forward_ref(params, x, f, tags, mask):
    embed_w = jnp.take(params["embed"], x, axis=0)
    embed_t = jnp.take(params["embed_tag"], tags, axis=0)
    f1 = f[:, 0][..., None].astype(embed_w.dtype)
    inp = jnp.concatenate([embed_w, embed_t, f1], axis=2)     # (B, T, D)
    B = inp.shape[0]
    H = HIDDEN

    def step(carry, x_t):
        h, c = carry
        gates = x_t @ params["w_ih"].T + h @ params["w_hh"].T + params["b_ih"] + params["b_hh"]
        i = jax.nn.sigmoid(gates[:, 0 * H:1 * H])
        fg = jax.nn.sigmoid(gates[:, 1 * H:2 * H])
        g = jnp.tanh(gates[:, 2 * H:3 * H])
        o = jax.nn.sigmoid(gates[:, 3 * H:4 * H])
        c = fg * c + i * g
        h = o * jnp.tanh(c)
        return (h, c), h

    h0 = jnp.zeros((B, H), jnp.float32)
    _, hs = jax.lax.scan(step, (h0, h0), jnp.transpose(inp, (1, 0, 2)))
    hs = jnp.transpose(hs, (1, 0, 2))                         # (B, T, H)
    y = hs @ params["w_out"].T + params["b_out"]
    return y * mask[..., None].astype(y.dtype)


if __name__ == "__main__":
    B, T = 2, 8
    key = jax.random.PRNGKey(0)
    kp, kx, kt, kf = jax.random.split(key, 4)

    params = init_params(kp)

    # lengths must be sorted descending (pack_padded_sequence default); max len == T
    lengths = jnp.array([8, 5], dtype=jnp.int32)
    mask = (jnp.arange(T)[None, :] < lengths[:, None]).astype(jnp.float32)   # (B, T)

    x = jax.random.randint(kx, (B, T), 0, VOCAB_SIZE, dtype=jnp.int32) * mask.astype(jnp.int32)
    tags = jax.random.randint(kt, (B, T), 0, NUM_TAGS, dtype=jnp.int32) * mask.astype(jnp.int32)
    f = jax.random.normal(kf, (B, 2, T), jnp.float32)

    y = lstm_forward(params, x, f, tags, mask)
    y = jax.block_until_ready(y)

    y_ref = lstm_forward_ref(params, x, f, tags, mask)
    assert y.shape == (B, T, NUM_TAGS)
    assert jnp.allclose(y, y_ref, atol=1e-4, rtol=1e-4), float(jnp.max(jnp.abs(y - y_ref)))

    print("KERNEL_OK")
</pallas_src>

<mosaic_0001>
module attributes {stable_mosaic.version = 11 : i64} {
  func.func @_lstm_chunk_kernel(%arg0: i32, %arg1: memref<64x25xf32, #tpu.memory_space<vmem>>, %arg2: memref<25x128xf32, #tpu.memory_space<vmem>>, %arg3: memref<32x128xf32, #tpu.memory_space<vmem>>, %arg4: memref<1x128xf32, #tpu.memory_space<vmem>>, %arg5: memref<64x32xf32, #tpu.memory_space<vmem>>, %arg6: memref<8x32xf32, #tpu.memory_space<vmem>>, %arg7: memref<8x32xf32, #tpu.memory_space<vmem>>, %arg8: memref<64x128xf32, #tpu.memory_space<vmem>>) attributes {dimension_semantics = [#tpu.dimension_semantics<arbitrary>], iteration_bounds = array<i64: 1>, scalar_prefetch = 0 : i64, scratch_operands = 3 : i64, tpu.core_type = #tpu.core_type<tc>, window_params = [{transform_indices = @transform_0, window_bounds = array<i64: 64, 25>}, {pipeline_mode = #tpu.pipeline_mode<synchronous>, transform_indices = @transform_1, window_bounds = array<i64: 25, 128>}, {pipeline_mode = #tpu.pipeline_mode<synchronous>, transform_indices = @transform_2, window_bounds = array<i64: 32, 128>}, {pipeline_mode = #tpu.pipeline_mode<synchronous>, transform_indices = @transform_3, window_bounds = array<i64: 1, 128>}, {transform_indices = @transform_4, window_bounds = array<i64: 64, 32>}]} {
    %c0_i32 = arith.constant 0 : i32
    %0 = arith.cmpi eq, %arg0, %c0_i32 : i32
    %1 = arith.extui %0 : i1 to i32
    %c0_i32_0 = arith.constant 0 : i32
    %2 = arith.cmpi ne, %1, %c0_i32_0 : i32
    scf.if %2 {
      %cst_55 = arith.constant 0.000000e+00 : f32
      %187 = vector.broadcast %cst_55 : f32 to vector<8x32xf32>
      %c0_56 = arith.constant 0 : index
      %c0_57 = arith.constant 0 : index
      %188 = vector.load %arg6[%c0_56, %c0_57] : memref<8x32xf32, #tpu.memory_space<vmem>>, vector<8x32xf32>
      tpu.vector_store %arg6[%c0_56, %c0_57], %187 {strides = array<i32>} : memref<8x32xf32, #tpu.memory_space<vmem>>, vector<8x32xf32>,
      %cst_58 = arith.constant 0.000000e+00 : f32
      %189 = vector.broadcast %cst_58 : f32 to vector<8x32xf32>
      %c0_59 = arith.constant 0 : index
      %c0_60 = arith.constant 0 : index
      %190 = vector.load %arg7[%c0_59, %c0_60] : memref<8x32xf32, #tpu.memory_space<vmem>>, vector<8x32xf32>
      tpu.vector_store %arg7[%c0_59, %c0_60], %189 {strides = array<i32>} : memref<8x32xf32, #tpu.memory_space<vmem>>, vector<8x32xf32>,
    } else {
    }
    %c0 = arith.constant 0 : index
    %c0_1 = arith.constant 0 : index
    %3 = vector.load %arg1[%c0, %c0_1] : memref<64x25xf32, #tpu.memory_space<vmem>>, vector<64x25xf32>
    %c0_2 = arith.constant 0 : index
    %c0_3 = arith.constant 0 : index
    %4 = vector.load %arg2[%c0_2, %c0_3] : memref<25x128xf32, #tpu.memory_space<vmem>>, vector<25x128xf32>
    %cst = arith.constant dense<0.000000e+00> : vector<64x128xf32>
    %5 = tpu.matmul %3, %4, %cst {dimension_numbers = #tpu.dot_dimension_numbers<[1], [0], [0], [1], [0, 0, 1, 1], [], []>} : vector<64x25xf32>, vector<25x128xf32>, vector<64x128xf32> -> vector<64x128xf32>
    %c0_4 = arith.constant 0 : index
    %c0_5 = arith.constant 0 : index
    %6 = vector.load %arg4[%c0_4, %c0_5] : memref<1x128xf32, #tpu.memory_space<vmem>>, vector<1x128xf32>
    %7 = vector.broadcast %6 : vector<1x128xf32> to vector<64x128xf32>
    %8 = arith.addf %5, %7 : vector<64x128xf32>
    %c0_6 = arith.constant 0 : index
    %c0_7 = arith.constant 0 : index
    %9 = vector.load %arg8[%c0_6, %c0_7] : memref<64x128xf32, #tpu.memory_space<vmem>>, vector<64x128xf32>
    tpu.vector_store %arg8[%c0_6, %c0_7], %8 {strides = array<i32>} : memref<64x128xf32, #tpu.memory_space<vmem>>, vector<64x128xf32>,
    %10 = tpu.iota {dimensions = array<i32: 1>} : vector<8x128xi32>
    %c64_i32 = arith.constant 64 : i32
    %11 = vector.broadcast %c64_i32 : i32 to vector<8x128xi32>
    %12 = arith.cmpi sge, %10, %11 : vector<8x128xi32>
    %c96_i32 = arith.constant 96 : i32
    %13 = vector.broadcast %c96_i32 : i32 to vector<8x128xi32>
    %14 = arith.cmpi slt, %10, %13 : vector<8x128xi32>
    %15 = arith.andi %12, %14 : vector<8x128xi1>
    %cst_8 = arith.constant 1.000000e+00 : f32
    %cst_9 = arith.constant 5.000000e-01 : f32
    %16 = vector.broadcast %cst_8 : f32 to vector<8x128xf32>
    %17 = vector.broadcast %cst_9 : f32 to vector<8x128xf32>
    %18 = arith.select %15, %16, %17 : vector<8x128xi1>, vector<8x128xf32>
    %cst_10 = arith.constant 0.000000e+00 : f32
    %cst_11 = arith.constant 5.000000e-01 : f32
    %19 = vector.broadcast %cst_10 : f32 to vector<8x128xf32>
    %20 = vector.broadcast %cst_11 : f32 to vector<8x128xf32>
    %21 = arith.select %15, %19, %20 : vector<8x128xi1>, vector<8x128xf32>
    %c0_12 = arith.constant 0 : index
    %c0_13 = arith.constant 0 : index
    %22 = vector.load %arg3[%c0_12, %c0_13] : memref<32x128xf32, #tpu.memory_space<vmem>>, vector<32x128xf32>
    %c0_14 = arith.constant 0 : index
    %c0_15 = arith.constant 0 : index
    %23 = vector.load %arg6[%c0_14, %c0_15] : memref<8x32xf32, #tpu.memory_space<vmem>>, vector<8x32xf32>
    %c0_16 = arith.constant 0 : index
    %c0_17 = arith.constant 0 : index
    %24 = vector.load %arg7[%c0_16, %c0_17] : memref<8x32xf32, #tpu.memory_space<vmem>>, vector<8x32xf32>
    %c0_i32_18 = arith.constant 0 : i32
    %c8_i32 = arith.constant 8 : i32
    %25 = arith.muli %c0_i32_18, %c8_i32 : i32
    %26 = tpu.assume_multiple %25, 8 : i32
    %27 = arith.index_cast %26 : i32 to index
    %c0_19 = arith.constant 0 : index
    %28 = vector.load %arg8[%27, %c0_19] : memref<64x128xf32, #tpu.memory_space<vmem>>, vector<8x128xf32>
    %cst_20 = arith.constant dense<0.000000e+00> : vector<8x128xf32>
    %29 = tpu.matmul %23, %22, %cst_20 {dimension_numbers = #tpu.dot_dimension_numbers<[1], [0], [0], [1], [0, 0, 1, 1], [], []>} : vector<8x32xf32>, vector<32x128xf32>, vector<8x128xf32> -> vector<8x128xf32>
    %30 = arith.addf %28, %29 : vector<8x128xf32>
    %31 = math.tanh %30 : vector<8x128xf32>
    %32 = arith.mulf %18, %31 : vector<8x128xf32>
    %33 = arith.addf %32, %21 : vector<8x128xf32>
    %34 = vector.extract_strided_slice %33 {offsets = [0, 0], sizes = [8, 32], strides = [1, 1]} : vector<8x128xf32> to vector<8x32xf32>
    %35 = vector.extract_strided_slice %33 {offsets = [0, 32], sizes = [8, 32], strides = [1, 1]} : vector<8x128xf32> to vector<8x32xf32>
    %36 = vector.extract_strided_slice %33 {offsets = [0, 64], sizes = [8, 32], strides = [1, 1]} : vector<8x128xf32> to vector<8x32xf32>
    %37 = vector.extract_strided_slice %33 {offsets = [0, 96], sizes = [8, 32], strides = [1, 1]} : vector<8x128xf32> to vector<8x32xf32>
    %38 = arith.mulf %35, %24 : vector<8x32xf32>
    %39 = arith.mulf %34, %36 : vector<8x32xf32>
    %40 = arith.addf %38, %39 : vector<8x32xf32>
    %41 = math.tanh %40 : vector<8x32xf32>
    %42 = arith.mulf %37, %41 : vector<8x32xf32>
    %43 = arith.index_cast %26 : i32 to index
    %c0_21 = arith.constant 0 : index
    %44 = vector.load %arg5[%43, %c0_21] : memref<64x32xf32, #tpu.memory_space<vmem>>, vector<8x32xf32>
    tpu.vector_store %arg5[%43, %c0_21], %42 {strides = array<i32>} : memref<64x32xf32, #tpu.memory_space<vmem>>, vector<8x32xf32>,
    %c1_i32 = arith.constant 1 : i32
    %c8_i32_22 = arith.constant 8 : i32
    %45 = arith.muli %c1_i32, %c8_i32_22 : i32
    %46 = tpu.assume_multiple %45, 8 : i32
    %47 = arith.index_cast %46 : i32 to index
    %c0_23 = arith.constant 0 : index
    %48 = vector.load %arg8[%47, %c0_23] : memref<64x128xf32, #tpu.memory_space<vmem>>, vector<8x128xf32>
    %cst_24 = arith.constant dense<0.000000e+00> : vector<8x128xf32>
    %49 = tpu.matmul %42, %22, %cst_24 {dimension_numbers = #tpu.dot_dimension_numbers<[1], [0], [0], [1], [0, 0, 1, 1], [], []>} : vector<8x32xf32>, vector<32x128xf32>, vector<8x128xf32> -> vector<8x128xf32>
    %50 = arith.addf %48, %49 : vector<8x128xf32>
    %51 = math.tanh %50 : vector<8x128xf32>
    %52 = arith.mulf %18, %51 : vector<8x128xf32>
    %53 = arith.addf %52, %21 : vector<8x128xf32>
    %54 = vector.extract_strided_slice %53 {offsets = [0, 0], sizes = [8, 32], strides = [1, 1]} : vector<8x128xf32> to vector<8x32xf32>
    %55 = vector.extract_strided_slice %53 {offsets = [0, 32], sizes = [8, 32], strides = [1, 1]} : vector<8x128xf32> to vector<8x32xf32>
    %56 = vector.extract_strided_slice %53 {offsets = [0, 64], sizes = [8, 32], strides = [1, 1]} : vector<8x128xf32> to vector<8x32xf32>
    %57 = vector.extract_strided_slice %53 {offsets = [0, 96], sizes = [8, 32], strides = [1, 1]} : vector<8x128xf32> to vector<8x32xf32>
    %58 = arith.mulf %55, %40 : vector<8x32xf32>
    %59 = arith.mulf %54, %56 : vector<8x32xf32>
    %60 = arith.addf %58, %59 : vector<8x32xf32>
    %61 = math.tanh %60 : vector<8x32xf32>
    %62 = arith.mulf %57, %61 : vector<8x32xf32>
    %63 = arith.index_cast %46 : i32 to index
    %c0_25 = arith.constant 0 : index
    %64 = vector.load %arg5[%63, %c0_25] : memref<64x32xf32, #tpu.memory_space<vmem>>, vector<8x32xf32>
    tpu.vector_store %arg5[%63, %c0_25], %62 {strides = array<i32>} : memref<64x32xf32, #tpu.memory_space<vmem>>, vector<8x32xf32>,
    %c2_i32 = arith.constant 2 : i32
    %c8_i32_26 = arith.constant 8 : i32
    %65 = arith.muli %c2_i32, %c8_i32_26 : i32
    %66 = tpu.assume_multiple %65, 8 : i32
    %67 = arith.index_cast %66 : i32 to index
    %c0_27 = arith.constant 0 : index
    %68 = vector.load %arg8[%67, %c0_27] : memref<64x128xf32, #tpu.memory_space<vmem>>, vector<8x128xf32>
    %cst_28 = arith.constant dense<0.000000e+00> : vector<8x128xf32>
    %69 = tpu.matmul %62, %22, %cst_28 {dimension_numbers = #tpu.dot_dimension_numbers<[1], [0], [0], [1], [0, 0, 1, 1], [], []>} : vector<8x32xf32>, vector<32x128xf32>, vector<8x128xf32> -> vector<8x128xf32>
    %70 = arith.addf %68, %69 : vector<8x128xf32>
    %71 = math.tanh %70 : vector<8x128xf32>
    %72 = arith.mulf %18, %71 : vector<8x128xf32>
    %73 = arith.addf %72, %21 : vector<8x128xf32>
    %74 = vector.extract_strided_slice %73 {offsets = [0, 0], sizes = [8, 32], strides = [1, 1]} : vector<8x128xf32> to vector<8x32xf32>
    %75 = vector.extract_strided_slice %73 {offsets = [0, 32], sizes = [8, 32], strides = [1, 1]} : vector<8x128xf32> to vector<8x32xf32>
    %76 = vector.extract_strided_slice %73 {offsets = [0, 64], sizes = [8, 32], strides = [1, 1]} : vector<8x128xf32> to vector<8x32xf32>
    %77 = vector.extract_strided_slice %73 {offsets = [0, 96], sizes = [8, 32], strides = [1, 1]} : vector<8x128xf32> to vector<8x32xf32>
    %78 = arith.mulf %75, %60 : vector<8x32xf32>
    %79 = arith.mulf %74, %76 : vector<8x32xf32>
    %80 = arith.addf %78, %79 : vector<8x32xf32>
    %81 = math.tanh %80 : vector<8x32xf32>
    %82 = arith.mulf %77, %81 : vector<8x32xf32>
    %83 = arith.index_cast %66 : i32 to index
    %c0_29 = arith.constant 0 : index
    %84 = vector.load %arg5[%83, %c0_29] : memref<64x32xf32, #tpu.memory_space<vmem>>, vector<8x32xf32>
    tpu.vector_store %arg5[%83, %c0_29], %82 {strides = array<i32>} : memref<64x32xf32, #tpu.memory_space<vmem>>, vector<8x32xf32>,
    %c3_i32 = arith.constant 3 : i32
    %c8_i32_30 = arith.constant 8 : i32
    %85 = arith.muli %c3_i32, %c8_i32_30 : i32
    %86 = tpu.assume_multiple %85, 8 : i32
    %87 = arith.index_cast %86 : i32 to index
    %c0_31 = arith.constant 0 : index
    %88 = vector.load %arg8[%87, %c0_31] : memref<64x128xf32, #tpu.memory_space<vmem>>, vector<8x128xf32>
    %cst_32 = arith.constant dense<0.000000e+00> : vector<8x128xf32>
    %89 = tpu.matmul %82, %22, %cst_32 {dimension_numbers = #tpu.dot_dimension_numbers<[1], [0], [0], [1], [0, 0, 1, 1], [], []>} : vector<8x32xf32>, vector<32x128xf32>, vector<8x128xf32> -> vector<8x128xf32>
    %90 = arith.addf %88, %89 : vector<8x128xf32>
    %91 = math.tanh %90 : vector<8x128xf32>
    %92 = arith.mulf %18, %91 : vector<8x128xf32>
    %93 = arith.addf %92, %21 : vector<8x128xf32>
    %94 = vector.extract_strided_slice %93 {offsets = [0, 0], sizes = [8, 32], strides = [1, 1]} : vector<8x128xf32> to vector<8x32xf32>
    %95 = vector.extract_strided_slice %93 {offsets = [0, 32], sizes = [8, 32], strides = [1, 1]} : vector<8x128xf32> to vector<8x32xf32>
    %96 = vector.extract_strided_slice %93 {offsets = [0, 64], sizes = [8, 32], strides = [1, 1]} : vector<8x128xf32> to vector<8x32xf32>
    %97 = vector.extract_strided_slice %93 {offsets = [0, 96], sizes = [8, 32], strides = [1, 1]} : vector<8x128xf32> to vector<8x32xf32>
    %98 = arith.mulf %95, %80 : vector<8x32xf32>
    %99 = arith.mulf %94, %96 : vector<8x32xf32>
    %100 = arith.addf %98, %99 : vector<8x32xf32>
    %101 = math.tanh %100 : vector<8x32xf32>
    %102 = arith.mulf %97, %101 : vector<8x32xf32>
    %103 = arith.index_cast %86 : i32 to index
    %c0_33 = arith.constant 0 : index
    %104 = vector.load %arg5[%103, %c0_33] : memref<64x32xf32, #tpu.memory_space<vmem>>, vector<8x32xf32>
    tpu.vector_store %arg5[%103, %c0_33], %102 {strides = array<i32>} : memref<64x32xf32, #tpu.memory_space<vmem>>, vector<8x32xf32>,
    %c4_i32 = arith.constant 4 : i32
    %c8_i32_34 = arith.constant 8 : i32
    %105 = arith.muli %c4_i32, %c8_i32_34 : i32
    %106 = tpu.assume_multiple %105, 8 : i32
    %107 = arith.index_cast %106 : i32 to index
    %c0_35 = arith.constant 0 : index
    %108 = vector.load %arg8[%107, %c0_35] : memref<64x128xf32, #tpu.memory_space<vmem>>, vector<8x128xf32>
    %cst_36 = arith.constant dense<0.000000e+00> : vector<8x128xf32>
    %109 = tpu.matmul %102, %22, %cst_36 {dimension_numbers = #tpu.dot_dimension_numbers<[1], [0], [0], [1], [0, 0, 1, 1], [], []>} : vector<8x32xf32>, vector<32x128xf32>, vector<8x128xf32> -> vector<8x128xf32>
    %110 = arith.addf %108, %109 : vector<8x128xf32>
    %111 = math.tanh %110 : vector<8x128xf32>
    %112 = arith.mulf %18, %111 : vector<8x128xf32>
    %113 = arith.addf %112, %21 : vector<8x128xf32>
    %114 = vector.extract_strided_slice %113 {offsets = [0, 0], sizes = [8, 32], strides = [1, 1]} : vector<8x128xf32> to vector<8x32xf32>
    %115 = vector.extract_strided_slice %113 {offsets = [0, 32], sizes = [8, 32], strides = [1, 1]} : vector<8x128xf32> to vector<8x32xf32>
    %116 = vector.extract_strided_slice %113 {offsets = [0, 64], sizes = [8, 32], strides = [1, 1]} : vector<8x128xf32> to vector<8x32xf32>
    %117 = vector.extract_strided_slice %113 {offsets = [0, 96], sizes = [8, 32], strides = [1, 1]} : vector<8x128xf32> to vector<8x32xf32>
    %118 = arith.mulf %115, %100 : vector<8x32xf32>
    %119 = arith.mulf %114, %116 : vector<8x32xf32>
    %120 = arith.addf %118, %119 : vector<8x32xf32>
    %121 = math.tanh %120 : vector<8x32xf32>
    %122 = arith.mulf %117, %121 : vector<8x32xf32>
    %123 = arith.index_cast %106 : i32 to index
    %c0_37 = arith.constant 0 : index
    %124 = vector.load %arg5[%123, %c0_37] : memref<64x32xf32, #tpu.memory_space<vmem>>, vector<8x32xf32>
    tpu.vector_store %arg5[%123, %c0_37], %122 {strides = array<i32>} : memref<64x32xf32, #tpu.memory_space<vmem>>, vector<8x32xf32>,
    %c5_i32 = arith.constant 5 : i32
    %c8_i32_38 = arith.constant 8 : i32
    %125 = arith.muli %c5_i32, %c8_i32_38 : i32
    %126 = tpu.assume_multiple %125, 8 : i32
    %127 = arith.index_cast %126 : i32 to index
    %c0_39 = arith.constant 0 : index
    %128 = vector.load %arg8[%127, %c0_39] : memref<64x128xf32, #tpu.memory_space<vmem>>, vector<8x128xf32>
    %cst_40 = arith.constant dense<0.000000e+00> : vector<8x128xf32>
    %129 = tpu.matmul %122, %22, %cst_40 {dimension_numbers = #tpu.dot_dimension_numbers<[1], [0], [0], [1], [0, 0, 1, 1], [], []>} : vector<8x32xf32>, vector<32x128xf32>, vector<8x128xf32> -> vector<8x128xf32>
    %130 = arith.addf %128, %129 : vector<8x128xf32>
    %131 = math.tanh %130 : vector<8x128xf32>
    %132 = arith.mulf %18, %131 : vector<8x128xf32>
    %133 = arith.addf %132, %21 : vector<8x128xf32>
    %134 = vector.extract_strided_slice %133 {offsets = [0, 0], sizes = [8, 32], strides = [1, 1]} : vector<8x128xf32> to vector<8x32xf32>
    %135 = vector.extract_strided_slice %133 {offsets = [0, 32], sizes = [8, 32], strides = [1, 1]} : vector<8x128xf32> to vector<8x32xf32>
    %136 = vector.extract_strided_slice %133 {offsets = [0, 64], sizes = [8, 32], strides = [1, 1]} : vector<8x128xf32> to vector<8x32xf32>
    %137 = vector.extract_strided_slice %133 {offsets = [0, 96], sizes = [8, 32], strides = [1, 1]} : vector<8x128xf32> to vector<8x32xf32>
    %138 = arith.mulf %135, %120 : vector<8x32xf32>
    %139 = arith.mulf %134, %136 : vector<8x32xf32>
    %140 = arith.addf %138, %139 : vector<8x32xf32>
    %141 = math.tanh %140 : vector<8x32xf32>
    %142 = arith.mulf %137, %141 : vector<8x32xf32>
    %143 = arith.index_cast %126 : i32 to index
    %c0_41 = arith.constant 0 : index
    %144 = vector.load %arg5[%143, %c0_41] : memref<64x32xf32, #tpu.memory_space<vmem>>, vector<8x32xf32>
    tpu.vector_store %arg5[%143, %c0_41], %142 {strides = array<i32>} : memref<64x32xf32, #tpu.memory_space<vmem>>, vector<8x32xf32>,
    %c6_i32 = arith.constant 6 : i32
    %c8_i32_42 = arith.constant 8 : i32
    %145 = arith.muli %c6_i32, %c8_i32_42 : i32
    %146 = tpu.assume_multiple %145, 8 : i32
    %147 = arith.index_cast %146 : i32 to index
    %c0_43 = arith.constant 0 : index
    %148 = vector.load %arg8[%147, %c0_43] : memref<64x128xf32, #tpu.memory_space<vmem>>, vector<8x128xf32>
    %cst_44 = arith.constant dense<0.000000e+00> : vector<8x128xf32>
    %149 = tpu.matmul %142, %22, %cst_44 {dimension_numbers = #tpu.dot_dimension_numbers<[1], [0], [0], [1], [0, 0, 1, 1], [], []>} : vector<8x32xf32>, vector<32x128xf32>, vector<8x128xf32> -> vector<8x128xf32>
    %150 = arith.addf %148, %149 : vector<8x128xf32>
    %151 = math.tanh %150 : vector<8x128xf32>
    %152 = arith.mulf %18, %151 : vector<8x128xf32>
    %153 = arith.addf %152, %21 : vector<8x128xf32>
    %154 = vector.extract_strided_slice %153 {offsets = [0, 0], sizes = [8, 32], strides = [1, 1]} : vector<8x128xf32> to vector<8x32xf32>
    %155 = vector.extract_strided_slice %153 {offsets = [0, 32], sizes = [8, 32], strides = [1, 1]} : vector<8x128xf32> to vector<8x32xf32>
    %156 = vector.extract_strided_slice %153 {offsets = [0, 64], sizes = [8, 32], strides = [1, 1]} : vector<8x128xf32> to vector<8x32xf32>
    %157 = vector.extract_strided_slice %153 {offsets = [0, 96], sizes = [8, 32], strides = [1, 1]} : vector<8x128xf32> to vector<8x32xf32>
    %158 = arith.mulf %155, %140 : vector<8x32xf32>
    %159 = arith.mulf %154, %156 : vector<8x32xf32>
    %160 = arith.addf %158, %159 : vector<8x32xf32>
    %161 = math.tanh %160 : vector<8x32xf32>
    %162 = arith.mulf %157, %161 : vector<8x32xf32>
    %163 = arith.index_cast %146 : i32 to index
    %c0_45 = arith.constant 0 : index
    %164 = vector.load %arg5[%163, %c0_45] : memref<64x32xf32, #tpu.memory_space<vmem>>, vector<8x32xf32>
    tpu.vector_store %arg5[%163, %c0_45], %162 {strides = array<i32>} : memref<64x32xf32, #tpu.memory_space<vmem>>, vector<8x32xf32>,
    %c7_i32 = arith.constant 7 : i32
    %c8_i32_46 = arith.constant 8 : i32
    %165 = arith.muli %c7_i32, %c8_i32_46 : i32
    %166 = tpu.assume_multiple %165, 8 : i32
    %167 = arith.index_cast %166 : i32 to index
    %c0_47 = arith.constant 0 : index
    %168 = vector.load %arg8[%167, %c0_47] : memref<64x128xf32, #tpu.memory_space<vmem>>, vector<8x128xf32>
    %cst_48 = arith.constant dense<0.000000e+00> : vector<8x128xf32>
    %169 = tpu.matmul %162, %22, %cst_48 {dimension_numbers = #tpu.dot_dimension_numbers<[1], [0], [0], [1], [0, 0, 1, 1], [], []>} : vector<8x32xf32>, vector<32x128xf32>, vector<8x128xf32> -> vector<8x128xf32>
    %170 = arith.addf %168, %169 : vector<8x128xf32>
    %171 = math.tanh %170 : vector<8x128xf32>
    %172 = arith.mulf %18, %171 : vector<8x128xf32>
    %173 = arith.addf %172, %21 : vector<8x128xf32>
    %174 = vector.extract_strided_slice %173 {offsets = [0, 0], sizes = [8, 32], strides = [1, 1]} : vector<8x128xf32> to vector<8x32xf32>
    %175 = vector.extract_strided_slice %173 {offsets = [0, 32], sizes = [8, 32], strides = [1, 1]} : vector<8x128xf32> to vector<8x32xf32>
    %176 = vector.extract_strided_slice %173 {offsets = [0, 64], sizes = [8, 32], strides = [1, 1]} : vector<8x128xf32> to vector<8x32xf32>
    %177 = vector.extract_strided_slice %173 {offsets = [0, 96], sizes = [8, 32], strides = [1, 1]} : vector<8x128xf32> to vector<8x32xf32>
    %178 = arith.mulf %175, %160 : vector<8x32xf32>
    %179 = arith.mulf %174, %176 : vector<8x32xf32>
    %180 = arith.addf %178, %179 : vector<8x32xf32>
    %181 = math.tanh %180 : vector<8x32xf32>
    %182 = arith.mulf %177, %181 : vector<8x32xf32>
    %183 = arith.index_cast %166 : i32 to index
    %c0_49 = arith.constant 0 : index
    %184 = vector.load %arg5[%183, %c0_49] : memref<64x32xf32, #tpu.memory_space<vmem>>, vector<8x32xf32>
    tpu.vector_store %arg5[%183, %c0_49], %182 {strides = array<i32>} : memref<64x32xf32, #tpu.memory_space<vmem>>, vector<8x32xf32>,
    %c8_i32_50 = arith.constant 8 : i32
    %c0_51 = arith.constant 0 : index
    %c0_52 = arith.constant 0 : index
    %185 = vector.load %arg6[%c0_51, %c0_52] : memref<8x32xf32, #tpu.memory_space<vmem>>, vector<8x32xf32>
    tpu.vector_store %arg6[%c0_51, %c0_52], %182 {strides = array<i32>} : memref<8x32xf32, #tpu.memory_space<vmem>>, vector<8x32xf32>,
    %c0_53 = arith.constant 0 : index
    %c0_54 = arith.constant 0 : index
    %186 = vector.load %arg7[%c0_53, %c0_54] : memref<8x32xf32, #tpu.memory_space<vmem>>, vector<8x32xf32>
    tpu.vector_store %arg7[%c0_53, %c0_54], %180 {strides = array<i32>} : memref<8x32xf32, #tpu.memory_space<vmem>>, vector<8x32xf32>,
    return
  }
  func.func @transform_0(%arg0: i32) -> (i32, i32) {
    %c0_i32 = arith.constant 0 : i32
    %c0_i32_0 = arith.constant 0 : i32
    return %arg0, %c0_i32 : i32, i32
  }
  func.func @transform_1(%arg0: i32) -> (i32, i32) {
    %c0_i32 = arith.constant 0 : i32
    %c0_i32_0 = arith.constant 0 : i32
    %c0_i32_1 = arith.constant 0 : i32
    return %c0_i32, %c0_i32_0 : i32, i32
  }
  func.func @transform_2(%arg0: i32) -> (i32, i32) {
    %c0_i32 = arith.constant 0 : i32
    %c0_i32_0 = arith.constant 0 : i32
    %c0_i32_1 = arith.constant 0 : i32
    return %c0_i32, %c0_i32_0 : i32, i32
  }
  func.func @transform_3(%arg0: i32) -> (i32, i32) {
    %c0_i32 = arith.constant 0 : i32
    %c0_i32_0 = arith.constant 0 : i32
    %c0_i32_1 = arith.constant 0 : i32
    return %c0_i32, %c0_i32_0 : i32, i32
  }
  func.func @transform_4(%arg0: i32) -> (i32, i32) {
    %c0_i32 = arith.constant 0 : i32
    %c0_i32_0 = arith.constant 0 : i32
    return %arg0, %c0_i32 : i32, i32
  }
}

</mosaic_0001>

<bundles_post_ra>
// kernel: lstm_forward.1
= control target key start
LH: loop header
LB: loop body
LE: loop exit
PB: predicated region body
PF: predicated region fallthrough
CT: control target
= control target key end

     0   :  { %vm65_vm0 = vcmask 1040384   ;;  %vm21_vm1 = vcmask 261120   ;;  %v627_v2 = vmov 0.0   ;;  %vm40_vm2 = vcmask 203776   ;;  %s630_s9 = smov 32   ;;  %s875_s1 = inlined_call_operand.vmem [shape: f32[25,128], index: 1, kind: input, shape index: {}]   ;;  %s876_s0 = inlined_call_operand.vmem [shape: f32[64,25], index: 0, kind: input, shape index: {}]   ;;  %s877_s3 = inlined_call_operand.vmem [shape: f32[1,128], index: 3, kind: input, shape index: {}]   ;;  %s878_s2 = inlined_call_operand.vmem [shape: f32[32,128], index: 2, kind: input, shape index: {}]   ;;  %s879_s4 = inlined_call_operand.vmem [shape: f32[64,32], index: 4, kind: output, shape index: {}]  }
   0x1   :  { %v35_v0 = vld [vmem:[%s875_s1 + $0x18] sm:$0x1]  ;;  %v34_v1 = vld [vmem:[%s875_s1 + $0x10] sm:$0xff]  ;;  %22 = vst.msk [vmem:[#allocation2] sm:$0xff] %vm21_vm1, %v627_v2  ;;  %v33_v3 = vld [vmem:[%s875_s1 + $0x8] sm:$0xff]  ;;  %v118_v13 = vlaneseq  ;;  %v628_v20 = vmov 0.5  }
   0x2   :  { %577 = vmatpush.msk.msra.mxu1 %vm65_vm0, %v35_v0  ;;  %553 = vmatpush.msk.msra.mxu0 %vm65_vm0, %v35_v0  ;;  %23 = vst.msk [vmem:[#allocation3] sm:$0xff] %vm21_vm1, %v627_v2  ;;  %v32_v4 = vld [vmem:[%s875_s1] sm:$0xff]  ;;  %v680_v7 = vld [vmem:[%s878_s2 + $0x18] sm:$0xff]  ;;  %v686_v8 = vld [vmem:[%s878_s2 + $0x10] sm:$0xff] }
   0x3   :  { %578 = vmatpush.msk.msra.mxu2 %vm65_vm0, %v35_v0  ;;  %579 = vmatpush.msk.msra.mxu3 %vm65_vm0, %v35_v0  ;;  %v28_v5 = vld [vmem:[%s876_s0 + $0x20] sm:$0xff]  ;;  %v693_v9 = vld [vmem:[%s878_s2 + $0x8] sm:$0xff]  ;;  %v119_v17 = vand.u32 127, %v118_v13  ;;  %v30_v53 = vld [vmem:[%s876_s0 + $0x30] sm:$0xff] }
   0x4   :  { %580 = vmatpush.msra.mxu1 %v34_v1  ;;  %82 = vmatpush.msra.mxu0 %v34_v1  ;;  %v24_v6 = vld [vmem:[%s876_s0] sm:$0xff]  ;;  %v29_v34 = vld [vmem:[%s876_s0 + $0x28] sm:$0xff]  ;;  %v31_v54 = vld [vmem:[%s876_s0 + $0x38] sm:$0xff] }
   0x5   :  { %581 = vmatpush.msra.mxu2 %v34_v1  ;;  %582 = vmatpush.msra.mxu3 %v34_v1  ;;  %v701_v10 = vld [vmem:[%s878_s2] sm:$0xff]  ;;  %vm120_vm3 = vcmp.ge.s32.totalorder %v119_v17, 64  ;;  %vm121_vm4 = vcmp.lt.s32.totalorder %v119_v17, 96  ;;  %v25_v37 = vld [vmem:[%s876_s0 + $0x8] sm:$0xff]  ;;  %v26_v57 = vld [vmem:[%s876_s0 + $0x10] sm:$0xff]  ;;  %s631_s2 = smov 96  }
   0x6   :  { %583 = vmatpush.msra.mxu1 %v33_v3  ;;  %83 = vmatpush.msra.mxu0 %v33_v3  ;;  %v725_v15 = vld [vmem:[%s877_s3] ss:$0 sm:$0xff]  ;;  %vm122_vm5 = vmand %vm120_vm3, %vm121_vm4  ;;  %s629_s3 = smov 64  }
   0x7   :  { %584 = vmatpush.msra.mxu2 %v33_v3  ;;  %585 = vmatpush.msra.mxu3 %v33_v3  ;;  %v728_v21 = vsel %vm122_vm5, 1.0, %v628_v20  ;;  %v730_v23 = vsel %vm122_vm5, 0.0, %v628_v20 }
   0x8   :  { %586 = vmatpush.msra.mxu1 %v32_v4  ;;  %84 = vmatpush.msra.mxu0 %v32_v4  ;;  %v129_v11 = vld [vmem:[#allocation2] sm:$0xff] }
   0x9   :  { %558 = vmatmul.msk.f32.vlgmr.msra.gmra.mxu1 %vm40_vm2, %v28_v5  ;;  %554 = vmatmul.msk.f32.vlgmr.msra.gmra.mxu0 %vm40_vm2, %v24_v6  ;;  %v130_v26 = vld [vmem:[#allocation3] sm:$0xff] }
   0xa   :  { %148 = vmatpush.msrb.mxu1 %v680_v7  ;;  %587 = vmatpush.msra.mxu2 %v32_v4 }
   0xb   :  { %588 = vmatpush.msra.mxu3 %v32_v4  ;;  %559 = vmatmul.msk.f32.vlgmr.msra.gmra.mxu2 %vm40_vm2, %v29_v34 }
   0xc   :  { %202 = vmatpush.msrb.mxu2 %v680_v7  ;;  %149 = vmatpush.msrb.mxu1 %v686_v8 }
   0xd   :  { %253 = vmatpush.msrb.mxu3 %v680_v7 }
   0xe   :  { %203 = vmatpush.msrb.mxu2 %v686_v8  ;;  %150 = vmatpush.msrb.mxu1 %v693_v9 }
   0xf   :  { %254 = vmatpush.msrb.mxu3 %v686_v8 }
  0x10   :  { %204 = vmatpush.msrb.mxu2 %v693_v9  ;;  %151 = vmatpush.msrb.mxu1 %v701_v10 }
  0x11   :  { %255 = vmatpush.msrb.mxu3 %v693_v9  ;;  %562 = vmatmul.msk.f32.vlgmr.msrb.gmra.mxu1 %vm21_vm1, %v129_v11 }
  0x12   :  { %205 = vmatpush.msrb.mxu2 %v701_v10  ;;  %304 = vmatpush.msra.mxu1 %v680_v7 }
  0x13   :  { %256 = vmatpush.msrb.mxu3 %v701_v10  ;;  %555 = vmatmul.msk.f32.gmra.mxu0 %vm40_vm2, %v25_v37 }
  0x14   :  { %305 = vmatpush.msra.mxu1 %v686_v8  ;;  %355 = vmatpush.msra.mxu2 %v680_v7 }
  0x15   :  { %560 = vmatmul.msk.f32.vlgmr.msra.gmra.mxu3 %vm40_vm2, %v30_v53 }
  0x16   :  { %306 = vmatpush.msra.mxu1 %v693_v9  ;;  %356 = vmatpush.msra.mxu2 %v686_v8 }
  0x17   :  { %406 = vmatpush.msra.mxu3 %v680_v7 }
  0x18   :  { %307 = vmatpush.msra.mxu1 %v701_v10  ;;  %357 = vmatpush.msra.mxu2 %v693_v9 }
  0x19   :  { %407 = vmatpush.msra.mxu3 %v686_v8 }
  0x1a   :  { %457 = vmatpush.msrb.mxu1 %v680_v7  ;;  %358 = vmatpush.msra.mxu2 %v701_v10 }
  0x1b   :  { %408 = vmatpush.msra.mxu3 %v693_v9  ;;  %556 = vmatmul.msk.f32.gmra.mxu0 %vm40_vm2, %v26_v57 }
  0x1c   :  { %458 = vmatpush.msrb.mxu1 %v686_v8 }
  0x1d   :  { %409 = vmatpush.msra.mxu3 %v701_v10 }
  0x1e   :  { %459 = vmatpush.msrb.mxu1 %v693_v9  ;;  %561 = vmatmul.msk.f32.gmra.mxu3 %vm40_vm2, %v31_v54 }
  0x20   :  { %460 = vmatpush.msrb.mxu1 %v701_v10 }
  0x86   :  { %v720_v12 = vpop.f32.mrf.mxu1  ;;  %v86_v14 = vpop.f32.mrf.mxu0 }
  0x87   :  { %v87_v16 = vadd.f32 %v725_v15, %v86_v14  ;;  %v99_v34 = vadd.f32 %v725_v15, %v720_v12 }
  0x8e   :  { %v153_v18 = vpop.f32.mrf.mxu1  ;;  %v760_v39 = vpop.f32.mrf.mxu2 }
  0x8f   :  { %v156_v19 = vadd.f32 %v153_v18, %v87_v16 }
  0x90   :  { %v89_v40 = vpop.f32.mrf.mxu0 }
  0x91   :  { %595 = vtanh.f32 %v156_v19  ;;  %v90_v41 = vadd.f32 %v725_v15, %v89_v40 }
  0x97   :  { %v596_v22 = vpop.eup %595 }
  0x98   :  { %v158_v24 = vmul.f32 %v596_v22, %v728_v21  ;;  %v790_v59 = vpop.f32.mrf.mxu3  ;;  %v92_v61 = vpop.f32.mrf.mxu0 }
  0x99   :  { %v93_v62 = vadd.f32 %v725_v15, %v92_v61 }
  0x9a   :  { %v159_v25 = vadd.f32 %v158_v24, %v730_v23 }
  0x9c   :  { %166 = vrot.lane.b32.xlu0 %v159_v25, %s629_s3 }
  0xa1   :  { %v792_v60 = vpop.f32.mrf.mxu3 }
  0xa4   :  { %161 = vrot.lane.b32.xlu0 %v130_v26, %s630_s9 }
 0x10e   :  { %v167_v27 = vpop.permute.xlu0 %166 }
 0x10f   :  { %v169_v28 = vmul.f32 %v167_v27, %v159_v25 }
 0x111   :  { %171 = vrot.lane.b32.xlu1 %v169_v28, %s630_s9 }
 0x116   :  { %v162_v29 = vpop.permute.xlu0 %161 }
 0x117   :  { %v164_v30 = vmul.f32 %v162_v29, %v159_v25 }
 0x183   :  { %v172_v31 = vpop.permute.xlu1 %171 }
 0x184   :  { %v174_v32 = vadd.f32 %v172_v31, %v164_v30 }
 0x186   :  { %597 = vtanh.f32 %v174_v32 }
 0x18c   :  { %v598_v33 = vpop.eup %597 }
 0x18d   :  { %177 = vrot.lane.b32.xlu1 %v598_v33, %s629_s3 }
 0x1ff   :  { %v178_v35 = vpop.permute.xlu1 %177 }
 0x200   :  { %v180_v36 = vmul.f32 %v178_v35, %v159_v25 }
 0x202   :  { %182 = vrot.lane.b32.xlu2 %v180_v36, %s630_s9 }
 0x25c   :  { %v183_v38 = vpop.permute.xlu2 %182 }
 0x25d   :  { %185 = vst.msk [vmem:[%s879_s4] sm:$0xff] %vm21_vm1, %v183_v38  ;;  %563 = vmatmul.msk.f32.vlgmr.msrb.gmra.mxu2 %vm21_vm1, %v183_v38 }
 0x25e   :  { %508 = vmatpush.msrb.mxu2 %v680_v7 }
 0x260   :  { %509 = vmatpush.msrb.mxu2 %v686_v8 }
 0x262   :  { %510 = vmatpush.msrb.mxu2 %v693_v9 }
 0x264   :  { %511 = vmatpush.msrb.mxu2 %v701_v10  ;;  %v27_v10 = vld [vmem:[%s876_s0 + $0x18] sm:$0xff] }
 0x265   :  { %557 = vmatmul.msk.f32.gmra.mxu0 %vm40_vm2, %v27_v10 }
 0x2e0   :  { %v207_v42 = vpop.f32.mrf.mxu2 }
 0x2e1   :  { %v210_v43 = vadd.f32 %v207_v42, %v90_v41 }
 0x2e2   :  { %v95_v16 = vpop.f32.mrf.mxu0 }
 0x2e3   :  { %599 = vtanh.f32 %v210_v43  ;;  %v96_v17 = vadd.f32 %v725_v15, %v95_v16 }
 0x2e9   :  { %v600_v44 = vpop.eup %599 }
 0x2ea   :  { %v212_v45 = vmul.f32 %v600_v44, %v728_v21 }
 0x2ec   :  { %v213_v46 = vadd.f32 %v212_v45, %v730_v23 }
 0x2ee   :  { %216 = vrot.lane.b32.xlu2 %v213_v46, %s629_s3  ;;  %v214_v49 = vmul.f32 %v213_v46, %v174_v32 }
 0x348   :  { %v217_v47 = vpop.permute.xlu2 %216 }
 0x349   :  { %v219_v48 = vmul.f32 %v217_v47, %v213_v46 }
 0x34b   :  { %221 = vrot.lane.b32.xlu0 %v219_v48, %s630_s9 }
 0x3bd   :  { %v222_v50 = vpop.permute.xlu0 %221 }
 0x3be   :  { %v224_v51 = vadd.f32 %v222_v50, %v214_v49  ;;  %v102_v49 = vadd.f32 %v725_v15, %v760_v39 }
 0x3c0   :  { %601 = vtanh.f32 %v224_v51 }
 0x3c6   :  { %v602_v52 = vpop.eup %601 }
 0x3c7   :  { %227 = vrot.lane.b32.xlu1 %v602_v52, %s629_s3 }
 0x439   :  { %v228_v55 = vpop.permute.xlu1 %227 }
 0x43a   :  { %v230_v56 = vmul.f32 %v228_v55, %v213_v46 }
 0x43c   :  { %232 = vrot.lane.b32.xlu2 %v230_v56, %s630_s9 }
 0x496   :  { %v233_v58 = vpop.permute.xlu2 %232 }
 0x497   :  { %564 = vst.msk [vmem:[%s879_s4 + $0x8] sm:$0xff] %vm21_vm1, %v233_v58  ;;  %565 = vmatmul.msk.f32.vlgmr.msrb.gmra.mxu3 %vm21_vm1, %v233_v58 }
 0x51a   :  { %v258_v63 = vpop.f32.mrf.mxu3 }
 0x51b   :  { %v261_v0 = vadd.f32 %v258_v63, %v93_v62 }
 0x51d   :  { %603 = vtanh.f32 %v261_v0 }
 0x523   :  { %v604_v1 = vpop.eup %603 }
 0x524   :  { %v263_v2 = vmul.f32 %v604_v1, %v728_v21  ;;  %v105_v1 = vadd.f32 %v725_v15, %v790_v59 }
 0x526   :  { %v264_v3 = vadd.f32 %v263_v2, %v730_v23 }
 0x528   :  { %267 = vrot.lane.b32.xlu0 %v264_v3, %s629_s3  ;;  %v265_v6 = vmul.f32 %v264_v3, %v224_v51 }
 0x59a   :  { %v268_v4 = vpop.permute.xlu0 %267 }
 0x59b   :  { %v270_v5 = vmul.f32 %v268_v4, %v264_v3 }
 0x59d   :  { %272 = vrot.lane.b32.xlu1 %v270_v5, %s630_s9 }
 0x60f   :  { %v273_v7 = vpop.permute.xlu1 %272 }
 0x610   :  { %v275_v8 = vadd.f32 %v273_v7, %v265_v6 }
 0x612   :  { %605 = vtanh.f32 %v275_v8 }
 0x618   :  { %v606_v9 = vpop.eup %605 }
 0x619   :  { %278 = vrot.lane.b32.xlu2 %v606_v9, %s629_s3 }
 0x673   :  { %v279_v11 = vpop.permute.xlu2 %278 }
 0x674   :  { %v281_v13 = vmul.f32 %v279_v11, %v264_v3 }
 0x676   :  { %283 = vrot.lane.b32.xlu0 %v281_v13, %s630_s9 }
 0x6e8   :  { %v284_v14 = vpop.permute.xlu0 %283 }
 0x6e9   :  { %566 = vst.msk [vmem:[%s879_s4 + $0x10] sm:$0xff] %vm21_vm1, %v284_v14  ;;  %567 = vmatmul.msk.f32.vlgmr.msra.gmra.mxu1 %vm21_vm1, %v284_v14 }
 0x766   :  { %v309_v18 = vpop.f32.mrf.mxu1 }
 0x767   :  { %v312_v19 = vadd.f32 %v309_v18, %v96_v17  ;;  %v108_v17 = vadd.f32 %v725_v15, %v792_v60 }
 0x769   :  { %607 = vtanh.f32 %v312_v19 }
 0x76f   :  { %v608_v20 = vpop.eup %607 }
 0x770   :  { %v314_v22 = vmul.f32 %v608_v20, %v728_v21 }
 0x772   :  { %v315_v24 = vadd.f32 %v314_v22, %v730_v23 }
 0x774   :  { %318 = vrot.lane.b32.xlu1 %v315_v24, %s629_s3  ;;  %v316_v27 = vmul.f32 %v315_v24, %v275_v8 }
 0x7e6   :  { %v319_v25 = vpop.permute.xlu1 %318 }
 0x7e7   :  { %v321_v26 = vmul.f32 %v319_v25, %v315_v24 }
 0x7e9   :  { %323 = vrot.lane.b32.xlu2 %v321_v26, %s630_s9 }
 0x843   :  { %v324_v28 = vpop.permute.xlu2 %323 }
 0x844   :  { %v326_v29 = vadd.f32 %v324_v28, %v316_v27 }
 0x846   :  { %609 = vtanh.f32 %v326_v29 }
 0x84c   :  { %v610_v30 = vpop.eup %609 }
 0x84d   :  { %329 = vrot.lane.b32.xlu0 %v610_v30, %s629_s3 }
 0x8bf   :  { %v330_v31 = vpop.permute.xlu0 %329 }
 0x8c0   :  { %v332_v32 = vmul.f32 %v330_v31, %v315_v24 }
 0x8c2   :  { %334 = vrot.lane.b32.xlu1 %v332_v32, %s630_s9 }
 0x934   :  { %v335_v33 = vpop.permute.xlu1 %334 }
 0x935   :  { %568 = vst.msk [vmem:[%s879_s4 + $0x18] sm:$0xff] %vm21_vm1, %v335_v33  ;;  %569 = vmatmul.msk.f32.vlgmr.msra.gmra.mxu2 %vm21_vm1, %v335_v33 }
 0x9b8   :  { %v360_v35 = vpop.f32.mrf.mxu2 }
 0x9b9   :  { %v363_v36 = vadd.f32 %v360_v35, %v99_v34 }
 0x9bb   :  { %611 = vtanh.f32 %v363_v36 }
 0x9c1   :  { %v612_v37 = vpop.eup %611 }
 0x9c2   :  { %v365_v38 = vmul.f32 %v612_v37, %v728_v21 }
 0x9c4   :  { %v366_v40 = vadd.f32 %v365_v38, %v730_v23 }
 0x9c6   :  { %369 = vrot.lane.b32.xlu2 %v366_v40, %s629_s3  ;;  %v367_v43 = vmul.f32 %v366_v40, %v326_v29 }
 0xa20   :  { %v370_v41 = vpop.permute.xlu2 %369 }
 0xa21   :  { %v372_v42 = vmul.f32 %v370_v41, %v366_v40 }
 0xa23   :  { %374 = vrot.lane.b32.xlu0 %v372_v42, %s630_s9 }
 0xa95   :  { %v375_v44 = vpop.permute.xlu0 %374 }
 0xa96   :  { %v377_v45 = vadd.f32 %v375_v44, %v367_v43 }
 0xa98   :  { %613 = vtanh.f32 %v377_v45 }
 0xa9e   :  { %v614_v46 = vpop.eup %613 }
 0xa9f   :  { %380 = vrot.lane.b32.xlu1 %v614_v46, %s629_s3 }
 0xb11   :  { %v381_v12 = vpop.permute.xlu1 %380 }
 0xb12   :  { %v383_v47 = vmul.f32 %v381_v12, %v366_v40 }
 0xb14   :  { %385 = vrot.lane.b32.xlu2 %v383_v47, %s630_s9 }
 0xb6e   :  { %v386_v48 = vpop.permute.xlu2 %385 }
 0xb6f   :  { %570 = vst.msk [vmem:[%s879_s4 + $0x20] sm:$0xff] %vm21_vm1, %v386_v48  ;;  %571 = vmatmul.msk.f32.vlgmr.msra.gmra.mxu3 %vm21_vm1, %v386_v48 }
 0xbf2   :  { %v411_v50 = vpop.f32.mrf.mxu3 }
 0xbf3   :  { %v414_v51 = vadd.f32 %v411_v50, %v102_v49 }
 0xbf5   :  { %615 = vtanh.f32 %v414_v51 }
 0xbfb   :  { %v616_v52 = vpop.eup %615 }
 0xbfc   :  { %v416_v53 = vmul.f32 %v616_v52, %v728_v21 }
 0xbfe   :  { %v417_v54 = vadd.f32 %v416_v53, %v730_v23 }
 0xc00   :  { %420 = vrot.lane.b32.xlu0 %v417_v54, %s629_s3  ;;  %v418_v57 = vmul.f32 %v417_v54, %v377_v45 }
 0xc72   :  { %v421_v55 = vpop.permute.xlu0 %420 }
 0xc73   :  { %v423_v56 = vmul.f32 %v421_v55, %v417_v54 }
 0xc75   :  { %425 = vrot.lane.b32.xlu1 %v423_v56, %s630_s9 }
 0xce7   :  { %v426_v58 = vpop.permute.xlu1 %425 }
 0xce8   :  { %v428_v61 = vadd.f32 %v426_v58, %v418_v57 }
 0xcea   :  { %617 = vtanh.f32 %v428_v61 }
 0xcf0   :  { %v618_v62 = vpop.eup %617 }
 0xcf1   :  { %431 = vrot.lane.b32.xlu2 %v618_v62, %s629_s3 }
 0xd4b   :  { %v432_v39 = vpop.permute.xlu2 %431 }
 0xd4c   :  { %v434_v63 = vmul.f32 %v432_v39, %v417_v54 }
 0xd4e   :  { %436 = vrot.lane.b32.xlu0 %v434_v63, %s630_s9 }
 0xdc0   :  { %v437_v0 = vpop.permute.xlu0 %436 }
 0xdc1   :  { %572 = vst.msk [vmem:[%s879_s4 + $0x28] sm:$0xff] %vm21_vm1, %v437_v0  ;;  %573 = vmatmul.msk.f32.vlgmr.msrb.gmra.mxu1 %vm21_vm1, %v437_v0 }
 0xe3e   :  { %v462_v2 = vpop.f32.mrf.mxu1 }
 0xe3f   :  { %v465_v3 = vadd.f32 %v462_v2, %v105_v1 }
 0xe41   :  { %619 = vtanh.f32 %v465_v3 }
 0xe47   :  { %v620_v4 = vpop.eup %619 }
 0xe48   :  { %v467_v5 = vmul.f32 %v620_v4, %v728_v21 }
 0xe4a   :  { %v468_v6 = vadd.f32 %v467_v5, %v730_v23 }
 0xe4c   :  { %471 = vrot.lane.b32.xlu1 %v468_v6, %s629_s3  ;;  %v469_v9 = vmul.f32 %v468_v6, %v428_v61 }
 0xebe   :  { %v472_v7 = vpop.permute.xlu1 %471 }
 0xebf   :  { %v474_v8 = vmul.f32 %v472_v7, %v468_v6 }
 0xec1   :  { %476 = vrot.lane.b32.xlu2 %v474_v8, %s630_s9 }
 0xf1b   :  { %v477_v10 = vpop.permute.xlu2 %476 }
 0xf1c   :  { %v479_v11 = vadd.f32 %v477_v10, %v469_v9 }
 0xf1e   :  { %621 = vtanh.f32 %v479_v11 }
 0xf24   :  { %v622_v13 = vpop.eup %621 }
 0xf25   :  { %482 = vrot.lane.b32.xlu0 %v622_v13, %s629_s3 }
 0xf97   :  { %v483_v59 = vpop.permute.xlu0 %482 }
 0xf98   :  { %v485_v14 = vmul.f32 %v483_v59, %v468_v6 }
 0xf9a   :  { %487 = vrot.lane.b32.xlu1 %v485_v14, %s630_s9 }
0x100c   :  { %v488_v16 = vpop.permute.xlu1 %487 }
0x100d   :  { %574 = vst.msk [vmem:[%s879_s4 + $0x30] sm:$0xff] %vm21_vm1, %v488_v16  ;;  %575 = vmatmul.msk.f32.vlgmr.msrb.gmra.mxu2 %vm21_vm1, %v488_v16 }
0x1090   :  { %v513_v18 = vpop.f32.mrf.mxu2 }
0x1091   :  { %v516_v19 = vadd.f32 %v513_v18, %v108_v17 }
0x1093   :  { %623 = vtanh.f32 %v516_v19 }
0x1099   :  { %v624_v20 = vpop.eup %623 }
0x109a   :  { %v518_v22 = vmul.f32 %v624_v20, %v728_v21 }
0x109c   :  { %v519_v24 = vadd.f32 %v518_v22, %v730_v23 }
0x109e   :  { %522 = vrot.lane.b32.xlu2 %v519_v24, %s629_s3  ;;  %v520_v27 = vmul.f32 %v519_v24, %v479_v11 }
0x10f8   :  { %v523_v25 = vpop.permute.xlu2 %522 }
0x10f9   :  { %v525_v26 = vmul.f32 %v523_v25, %v519_v24 }
0x10fb   :  { %527 = vrot.lane.b32.xlu0 %v525_v26, %s630_s9 }
0x116d   :  { %v528_v28 = vpop.permute.xlu0 %527 }
0x116e   :  { %v530_v29 = vadd.f32 %v528_v28, %v520_v27 }
0x1170   :  { %625 = vtanh.f32 %v530_v29  ;;  %545 = vrot.lane.b32.xlu0 %v530_v29, %s631_s2 }
0x1176   :  { %v626_v15 = vpop.eup %625 }
0x1177   :  { %533 = vrot.lane.b32.xlu1 %v626_v15, %s629_s3 }
0x11e2   :  { %v546_v60 = vpop.permute.xlu0 %545 }
0x11e3   :  { %548 = vst.msk [vmem:[#allocation3] sm:$0xff] %vm21_vm1, %v546_v60 }
0x11e9   :  { %v534_v21 = vpop.permute.xlu1 %533 }
0x11ea   :  { %v536_v23 = vmul.f32 %v534_v21, %v519_v24 }
0x11ec   :  { %538 = vrot.lane.b32.xlu2 %v536_v23, %s630_s9 }
0x1246   :  { %v539_v30 = vpop.permute.xlu2 %538 }
0x1247   :  { %576 = vst.msk [vmem:[%s879_s4 + $0x38] sm:$0xff] %vm21_vm1, %v539_v30 }
0x1248   :  { %543 = vst.msk [vmem:[#allocation2] sm:$0xff] %vm21_vm1, %v539_v30 }

</bundles_post_ra>
